<compile_context>
chip_gen: v6e
topology: v6e:2x2x1
jax: 0.10.0
libtpu: 0.0.40
codegen_flags: <defaults>
</compile_context>

<pallas_src>
import functools

import jax
import jax.numpy as jnp
from jax.experimental import pallas as pl
from jax.experimental.pallas import tpu as pltpu


def _attn_kernel(g_ref, x_ref, wg_ref, wx_ref, bsum_ref, wpsi_ref, bpsi_ref,
                 out_ref):
    # g_ref:   (1, F_g, T)      x_ref:  (1, F_l, T)
    # wg_ref:  (F_int, F_g)     wx_ref: (F_int, F_l)
    # bsum_ref:(F_int, 1)       wpsi_ref:(F_int, 1)   bpsi_ref:(1, 1)
    # out_ref: (1, F_l, T)
    g = g_ref[0]                                   # (F_g, T)
    x = x_ref[0]                                   # (F_l, T)

    # 1x1 convs as channel matmuls (MXU, f32 accumulation), lane axis = spatial.
    g1 = jnp.dot(wg_ref[...], g, preferred_element_type=jnp.float32)
    x1 = jnp.dot(wx_ref[...], x, preferred_element_type=jnp.float32)

    # ReLU(g1 + x1 + (b_g + b_x))  -> (F_int, T)
    p = jnp.maximum(g1 + x1 + bsum_ref[...], 0.0)

    # psi projection to 1 channel: VPU multiply + sublane (XLU) reduce instead
    # of a degenerate N=1 MXU matmul.
    s = jnp.sum(p * wpsi_ref[...], axis=0, keepdims=True) + bpsi_ref[...]  # (1, T)
    psi = jax.nn.sigmoid(s)

    # Gate x; broadcast psi across the (small) channel sublanes.
    out_ref[0, :, :] = (x.astype(jnp.float32) * psi).astype(out_ref.dtype)


def _fold_bn(w, b, gamma, beta, mean, var, eps=1e-5):
    """Fold eval-mode BatchNorm into a 1x1 conv.  w: (Cin, Cout), b: (Cout,)."""
    scale = gamma / jnp.sqrt(var + eps)
    w_f = w * scale[None, :]
    b_f = (b - mean) * scale + beta
    return w_f, b_f


def _pick_tile_hw(hw, cap=2048):
    """Largest lane-dense spatial tile <= cap (multiple of 128 or full extent)."""
    if hw <= cap:
        return hw                       # full extent always legal as a block dim
    t = cap - (cap % 128)
    for cand in range(t, 127, -128):    # prefer a divisor (no partial tail)
        if hw % cand == 0:
            return cand
    return t                            # cdiv grid; partial tail tile is safe


@functools.partial(jax.jit, static_argnames=("tile_hw", "vmem_limit_bytes"))
def attention_block(g, x, params, tile_hw=None, vmem_limit_bytes=64 * 1024 * 1024):
    """g: (N, F_g, H, W), x: (N, F_l, H, W)  ->  (N, F_l, H, W)   (NCHW, like PyTorch)."""
    N, F_g, H, W = g.shape
    _, F_l, _, _ = x.shape
    HW = H * W

    wg, bg = _fold_bn(params["wg"], params["bg"], params["bn_g_gamma"],
                      params["bn_g_beta"], params["bn_g_mean"], params["bn_g_var"])
    wx, bx = _fold_bn(params["wx"], params["bx"], params["bn_x_gamma"],
                      params["bn_x_beta"], params["bn_x_mean"], params["bn_x_var"])
    wpsi, bpsi = _fold_bn(params["wpsi"], params["bpsi"], params["bn_p_gamma"],
                          params["bn_p_beta"], params["bn_p_mean"], params["bn_p_var"])
    F_int = wg.shape[1]

    # Free reshapes: NCHW -> (N, C, H*W).  No HBM transposes.
    g3 = g.reshape(N, F_g, HW)
    x3 = x.reshape(N, F_l, HW)

    # Weights as (Cout, Cin) for (F_int, C) @ (C, T); tiny, folded at trace time.
    wg_t = wg.T                                    # (F_int, F_g)
    wx_t = wx.T                                    # (F_int, F_l)
    b_sum = (bg + bx).reshape(F_int, 1)            # pre-summed conv biases
    wpsi_c = wpsi.reshape(F_int, 1)
    bpsi_s = bpsi.reshape(1, 1)

    if tile_hw is None:
        tile_hw = _pick_tile_hw(HW)
    grid = (N, pl.cdiv(HW, tile_hw))

    weight_spec = lambda shape: pl.BlockSpec(shape, lambda n, t: (0, 0))

    out3 = pl.pallas_call(
        _attn_kernel,
        out_shape=jax.ShapeDtypeStruct((N, F_l, HW), x.dtype),
        grid_spec=pltpu.PrefetchScalarGridSpec(
            num_scalar_prefetch=0,
            grid=grid,
            in_specs=[
                pl.BlockSpec((1, F_g, tile_hw), lambda n, t: (n, 0, t)),   # g tile
                pl.BlockSpec((1, F_l, tile_hw), lambda n, t: (n, 0, t)),   # x tile
                weight_spec((F_int, F_g)),                                  # W_g^T
                weight_spec((F_int, F_l)),                                  # W_x^T
                weight_spec((F_int, 1)),                                    # b_g + b_x
                weight_spec((F_int, 1)),                                    # W_psi
                weight_spec((1, 1)),                                        # b_psi
            ],
            out_specs=pl.BlockSpec((1, F_l, tile_hw), lambda n, t: (n, 0, t)),
        ),
        compiler_params=pltpu.CompilerParams(
            dimension_semantics=("parallel", "parallel"),
            vmem_limit_bytes=vmem_limit_bytes,
        ),
    )(g3, x3, wg_t, wx_t, b_sum, wpsi_c, bpsi_s)

    return out3.reshape(N, F_l, H, W)


def make_params(key, F_g, F_l, F_int):
    ks = jax.random.split(key, 6)
    p = {
        # 1x1 conv weights stored as (Cin, Cout); PyTorch stores (Cout, Cin, 1, 1).
        "wg": jax.random.normal(ks[0], (F_g, F_int), jnp.float32) * 0.1,
        "bg": jax.random.normal(ks[1], (F_int,), jnp.float32) * 0.1,
        "wx": jax.random.normal(ks[2], (F_l, F_int), jnp.float32) * 0.1,
        "bx": jax.random.normal(ks[3], (F_int,), jnp.float32) * 0.1,
        "wpsi": jax.random.normal(ks[4], (F_int, 1), jnp.float32) * 0.1,
        "bpsi": jax.random.normal(ks[5], (1,), jnp.float32) * 0.1,
        # BatchNorm params (eval mode): gamma/beta learnable, running mean/var.
        "bn_g_gamma": jnp.ones((F_int,), jnp.float32),
        "bn_g_beta": jnp.zeros((F_int,), jnp.float32),
        "bn_g_mean": jnp.zeros((F_int,), jnp.float32),
        "bn_g_var": jnp.ones((F_int,), jnp.float32),
        "bn_x_gamma": jnp.ones((F_int,), jnp.float32),
        "bn_x_beta": jnp.zeros((F_int,), jnp.float32),
        "bn_x_mean": jnp.zeros((F_int,), jnp.float32),
        "bn_x_var": jnp.ones((F_int,), jnp.float32),
        "bn_p_gamma": jnp.ones((1,), jnp.float32),
        "bn_p_beta": jnp.zeros((1,), jnp.float32),
        "bn_p_mean": jnp.zeros((1,), jnp.float32),
        "bn_p_var": jnp.ones((1,), jnp.float32),
    }
    return p


def reference(g, x, params):
    """Pure-JAX reference of the same (eval-mode BN) forward, NCHW."""
    wg, bg = _fold_bn(params["wg"], params["bg"], params["bn_g_gamma"],
                      params["bn_g_beta"], params["bn_g_mean"], params["bn_g_var"])
    wx, bx = _fold_bn(params["wx"], params["bx"], params["bn_x_gamma"],
                      params["bn_x_beta"], params["bn_x_mean"], params["bn_x_var"])
    wpsi, bpsi = _fold_bn(params["wpsi"], params["bpsi"], params["bn_p_gamma"],
                          params["bn_p_beta"], params["bn_p_mean"], params["bn_p_var"])
    g1 = jnp.einsum("nchw,cf->nfhw", g, wg) + bg[None, :, None, None]
    x1 = jnp.einsum("nchw,cf->nfhw", x, wx) + bx[None, :, None, None]
    p = jnp.maximum(g1 + x1, 0.0)
    psi = jax.nn.sigmoid(jnp.einsum("nfhw,fo->nohw", p, wpsi)
                         + bpsi[None, :, None, None])
    return x * psi


if __name__ == "__main__":
    key = jax.random.PRNGKey(0)
    k_g, k_x, k_p = jax.random.split(key, 3)

    N, F_g, F_l, F_int, H, W = 2, 4, 4, 8, 16, 16
    g = jax.random.normal(k_g, (N, F_g, H, W), jnp.float32)
    x = jax.random.normal(k_x, (N, F_l, H, W), jnp.float32)
    params = make_params(k_p, F_g, F_l, F_int)

    out = attention_block(g, x, params)
    out = jax.block_until_ready(out)

    ref = reference(g, x, params)
    assert out.shape == (N, F_l, H, W)
    assert jnp.allclose(out, ref, atol=1e-5, rtol=1e-5), "mismatch vs reference"

    print("KERNEL_OK")
</pallas_src>

<mosaic_0001>
module attributes {stable_mosaic.version = 11 : i64} {
  func.func @_attn_kernel(%arg0: i32, %arg1: i32, %arg2: memref<1x4x256xf32, #tpu.memory_space<vmem>>, %arg3: memref<1x4x256xf32, #tpu.memory_space<vmem>>, %arg4: memref<8x4xf32, #tpu.memory_space<vmem>>, %arg5: memref<8x4xf32, #tpu.memory_space<vmem>>, %arg6: memref<8x1xf32, #tpu.memory_space<vmem>>, %arg7: memref<8x1xf32, #tpu.memory_space<vmem>>, %arg8: memref<1x1xf32, #tpu.memory_space<vmem>>, %arg9: memref<1x4x256xf32, #tpu.memory_space<vmem>>) attributes {dimension_semantics = [#tpu.dimension_semantics<parallel>, #tpu.dimension_semantics<parallel>], iteration_bounds = array<i64: 2, 1>, scalar_prefetch = 0 : i64, scratch_operands = 0 : i64, tpu.core_type = #tpu.core_type<tc>, window_params = [{transform_indices = @transform_0, window_bounds = array<i64: 1, 4, 256>}, {transform_indices = @transform_1, window_bounds = array<i64: 1, 4, 256>}, {pipeline_mode = #tpu.pipeline_mode<synchronous>, transform_indices = @transform_2, window_bounds = array<i64: 8, 4>}, {pipeline_mode = #tpu.pipeline_mode<synchronous>, transform_indices = @transform_3, window_bounds = array<i64: 8, 4>}, {pipeline_mode = #tpu.pipeline_mode<synchronous>, transform_indices = @transform_4, window_bounds = array<i64: 8, 1>}, {pipeline_mode = #tpu.pipeline_mode<synchronous>, transform_indices = @transform_5, window_bounds = array<i64: 8, 1>}, {pipeline_mode = #tpu.pipeline_mode<synchronous>, transform_indices = @transform_6, window_bounds = array<i64: 1, 1>}, {transform_indices = @transform_7, window_bounds = array<i64: 1, 4, 256>}]} {
    %c0 = arith.constant 0 : index
    %c0_0 = arith.constant 0 : index
    %c0_1 = arith.constant 0 : index
    %0 = vector.load %arg2[%c0, %c0_0, %c0_1] : memref<1x4x256xf32, #tpu.memory_space<vmem>>, vector<1x4x256xf32>
    %1 = vector.shape_cast %0 : vector<1x4x256xf32> to vector<4x256xf32>
    %c0_2 = arith.constant 0 : index
    %c0_3 = arith.constant 0 : index
    %c0_4 = arith.constant 0 : index
    %2 = vector.load %arg3[%c0_2, %c0_3, %c0_4] : memref<1x4x256xf32, #tpu.memory_space<vmem>>, vector<1x4x256xf32>
    %3 = vector.shape_cast %2 : vector<1x4x256xf32> to vector<4x256xf32>
    %c0_5 = arith.constant 0 : index
    %c0_6 = arith.constant 0 : index
    %4 = vector.load %arg4[%c0_5, %c0_6] : memref<8x4xf32, #tpu.memory_space<vmem>>, vector<8x4xf32>
    %cst = arith.constant dense<0.000000e+00> : vector<8x256xf32>
    %5 = tpu.matmul %4, %1, %cst {dimension_numbers = #tpu.dot_dimension_numbers<[1], [0], [0], [1], [0, 0, 1, 1], [], []>} : vector<8x4xf32>, vector<4x256xf32>, vector<8x256xf32> -> vector<8x256xf32>
    %c0_7 = arith.constant 0 : index
    %c0_8 = arith.constant 0 : index
    %6 = vector.load %arg5[%c0_7, %c0_8] : memref<8x4xf32, #tpu.memory_space<vmem>>, vector<8x4xf32>
    %cst_9 = arith.constant dense<0.000000e+00> : vector<8x256xf32>
    %7 = tpu.matmul %6, %3, %cst_9 {dimension_numbers = #tpu.dot_dimension_numbers<[1], [0], [0], [1], [0, 0, 1, 1], [], []>} : vector<8x4xf32>, vector<4x256xf32>, vector<8x256xf32> -> vector<8x256xf32>
    %8 = arith.addf %5, %7 : vector<8x256xf32>
    %c0_10 = arith.constant 0 : index
    %c0_11 = arith.constant 0 : index
    %9 = vector.load %arg6[%c0_10, %c0_11] : memref<8x1xf32, #tpu.memory_space<vmem>>, vector<8x1xf32>
    %10 = vector.broadcast %9 : vector<8x1xf32> to vector<8x256xf32>
    %11 = arith.addf %8, %10 : vector<8x256xf32>
    %cst_12 = arith.constant 0.000000e+00 : f32
    %12 = vector.broadcast %cst_12 : f32 to vector<8x256xf32>
    %13 = arith.maximumf %11, %12 : vector<8x256xf32>
    %c0_13 = arith.constant 0 : index
    %c0_14 = arith.constant 0 : index
    %14 = vector.load %arg7[%c0_13, %c0_14] : memref<8x1xf32, #tpu.memory_space<vmem>>, vector<8x1xf32>
    %15 = vector.broadcast %14 : vector<8x1xf32> to vector<8x256xf32>
    %16 = arith.mulf %13, %15 : vector<8x256xf32>
    %cst_15 = arith.constant dense<0.000000e+00> : vector<256xf32>
    %17 = vector.multi_reduction <add>, %16, %cst_15 [0] : vector<8x256xf32> to vector<256xf32>
    %18 = vector.shape_cast %17 : vector<256xf32> to vector<1x256xf32>
    %c0_16 = arith.constant 0 : index
    %c0_17 = arith.constant 0 : index
    %19 = vector.load %arg8[%c0_16, %c0_17] : memref<1x1xf32, #tpu.memory_space<vmem>>, vector<1x1xf32>
    %20 = vector.broadcast %19 : vector<1x1xf32> to vector<1x256xf32>
    %21 = arith.addf %18, %20 : vector<1x256xf32>
    %22 = arith.negf %21 : vector<1x256xf32>
    %23 = math.exp %22 : vector<1x256xf32>
    %cst_18 = arith.constant 1.000000e+00 : f32
    %24 = vector.broadcast %cst_18 : f32 to vector<1x256xf32>
    %25 = arith.addf %24, %23 : vector<1x256xf32>
    %26 = arith.divf %24, %25 : vector<1x256xf32>
    %27 = vector.broadcast %26 : vector<1x256xf32> to vector<4x256xf32>
    %28 = arith.mulf %3, %27 : vector<4x256xf32>
    %c0_19 = arith.constant 0 : index
    %c0_20 = arith.constant 0 : index
    %c0_21 = arith.constant 0 : index
    %29 = vector.load %arg9[%c0_19, %c0_20, %c0_21] : memref<1x4x256xf32, #tpu.memory_space<vmem>>, vector<1x4x256xf32>
    %30 = vector.shape_cast %29 : vector<1x4x256xf32> to vector<4x256xf32>
    %31 = vector.shape_cast %28 : vector<4x256xf32> to vector<1x4x256xf32>
    tpu.vector_store %arg9[%c0_19, %c0_20, %c0_21], %31 {strides = array<i32>} : memref<1x4x256xf32, #tpu.memory_space<vmem>>, vector<1x4x256xf32>,
    return
  }
  func.func @transform_0(%arg0: i32, %arg1: i32) -> (i32, i32, i32) {
    %c0_i32 = arith.constant 0 : i32
    %c0_i32_0 = arith.constant 0 : i32
    return %arg0, %c0_i32, %arg1 : i32, i32, i32
  }
  func.func @transform_1(%arg0: i32, %arg1: i32) -> (i32, i32, i32) {
    %c0_i32 = arith.constant 0 : i32
    %c0_i32_0 = arith.constant 0 : i32
    return %arg0, %c0_i32, %arg1 : i32, i32, i32
  }
  func.func @transform_2(%arg0: i32, %arg1: i32) -> (i32, i32) {
    %c0_i32 = arith.constant 0 : i32
    %c0_i32_0 = arith.constant 0 : i32
    %c0_i32_1 = arith.constant 0 : i32
    return %c0_i32, %c0_i32_0 : i32, i32
  }
  func.func @transform_3(%arg0: i32, %arg1: i32) -> (i32, i32) {
    %c0_i32 = arith.constant 0 : i32
    %c0_i32_0 = arith.constant 0 : i32
    %c0_i32_1 = arith.constant 0 : i32
    return %c0_i32, %c0_i32_0 : i32, i32
  }
  func.func @transform_4(%arg0: i32, %arg1: i32) -> (i32, i32) {
    %c0_i32 = arith.constant 0 : i32
    %c0_i32_0 = arith.constant 0 : i32
    %c0_i32_1 = arith.constant 0 : i32
    return %c0_i32, %c0_i32_0 : i32, i32
  }
  func.func @transform_5(%arg0: i32, %arg1: i32) -> (i32, i32) {
    %c0_i32 = arith.constant 0 : i32
    %c0_i32_0 = arith.constant 0 : i32
    %c0_i32_1 = arith.constant 0 : i32
    return %c0_i32, %c0_i32_0 : i32, i32
  }
  func.func @transform_6(%arg0: i32, %arg1: i32) -> (i32, i32) {
    %c0_i32 = arith.constant 0 : i32
    %c0_i32_0 = arith.constant 0 : i32
    %c0_i32_1 = arith.constant 0 : i32
    return %c0_i32, %c0_i32_0 : i32, i32
  }
  func.func @transform_7(%arg0: i32, %arg1: i32) -> (i32, i32, i32) {
    %c0_i32 = arith.constant 0 : i32
    %c0_i32_0 = arith.constant 0 : i32
    return %arg0, %c0_i32, %arg1 : i32, i32, i32
  }
}

</mosaic_0001>

<bundles_post_ra>
// kernel: attention_block.1
= control target key start
LH: loop header
LB: loop body
LE: loop exit
PB: predicated region body
PF: predicated region fallthrough
CT: control target
= control target key end

     0   :  { %s818_s26 = smov 0   ;;  %s820_s27 = smov 0   ;;  %s877_s0 = inlined_call_operand.vmem [shape: f32[2,4,256], index: 0, kind: input, shape index: {}]   ;;  %s878_s1 = inlined_call_operand.vmem [shape: f32[2,4,256], index: 1, kind: input, shape index: {}]   ;;  %s879_s2 = inlined_call_operand.vmem [shape: f32[8,4], index: 2, kind: input, shape index: {}]   ;;  %s880_s3 = inlined_call_operand.vmem [shape: f32[8,4], index: 3, kind: input, shape index: {}]   ;;  %s881_s4 = inlined_call_operand.vmem [shape: f32[8,1], index: 4, kind: input, shape index: {}]   ;;  %s882_s5 = inlined_call_operand.vmem [shape: f32[8,1], index: 5, kind: input, shape index: {}]   ;;  %s883_s6 = inlined_call_operand.<no memory space> [shape: f32[1,1], index: 6, kind: input, shape index: {}]   ;;  %s884_s7 = inlined_call_operand.vmem [shape: f32[2,4,256], index: 7, kind: output, shape index: {}]  }
   0x1   :  { %v12_v0 = vstv %s883_s6  ;;  %s822_s28 = smov 0  }
   0x2   :  { %13 = vst [vmem:[#allocation2] sm:$0x1] %v12_v0 }
   0x3 LB: > { %s31_s6 = sadd.s32 1, %s767_s27  ;;  %p691_p0 = scmp.ge.s32.totalorder %s771_s28, 1  ;;  %s771_s28 = sphi %s822_s28, %s19_s28   ;;  %s767_s27 = sphi %s820_s27, %s886_s27   ;;  %s763_s26 = sphi %s818_s26, %s885_s26  }
   0x4   : > { %p33_p1 = scmp.ge.s32.totalorder %s31_s6, 2  ;;  %p277_p2 = scmp.lt.s32.totalorder %s771_s28, 3 }
   0x6   : > { %s888_s6 = smov (%p33_p1, %s31_s6), 0  ;;  %p278_p3 = pnand %p691_p0, %p277_p2 }
   0x7   : > { %p327_p4 = scmp.lt.s32.totalorder (!%p278_p3), %s763_s26, 1 }
   0x8   : > { %281 = sbr.rel (%p278_p3) target bundleno = 276 (0x114), region = 48 }
   0xd   : > { %v773_v1 = vmov 0.0   ;;  %v522_v2 = vld [vmem:[%s881_s4] sm:$0xff]  ;;  %s890_s26 = smov (!%p327_p4, %s763_s26), 1  ;;  %v774_v4 = vmov 0   ;;  %vm366_vm0 = vcmask 1043456   ;;  %vm362_vm1 = vcmask 31744  }
   0xe   : > { %435 = vmatprep.mubr.f32.mxu0 %v773_v1  ;;  %515 = vmatprep.mubr.f32.mxu1 %v773_v1  ;;  %v552_v3 = vld [vmem:[#allocation2] sm:$0x1]  ;;  %s839_s8 = sshll.u32 %s890_s26, 3  ;;  %v558_v22 = vlaneseq }
   0xf   : > { %737 = vset.pattern.permute.xlu0 %v774_v4  ;;  %738 = vset.pattern.permute.xlu1 %v774_v4  ;;  %v532_v5 = vld [vmem:[%s882_s5] sm:$0xff]  ;;  %s344_s13 = scalar_lea.vmem %s878_s1, %s839_s8  ;;  %s334_s16 = scalar_lea.vmem %s877_s0, %s839_s8 }
  0x10   : > { %525 = vperm.xlu0 %737, %v522_v2   ;;  %555 = vperm.xlu1 %738, %v552_v3   ;;  %v848_v6 = vld [vmem:[%s344_s13] sm:$0xff]  ;;  %v559_v28 = vshrl.u32 %v558_v22, 7  ;;  %s354_s23 = scalar_lea.vmem %s884_s7, %s839_s8 }
  0x11   : > { %v361_v7 = vcombine.high %v848_v6, %v848_v6  ;;  %v356_v8 = vld [vmem:[%s334_s16] sm:$0xff] }
  0x12   : > { %v443_v9 = vcombine.high %v356_v8, %v356_v8  ;;  %v359_v10 = vld [vmem:[%s880_s3] sm:$0xff]  ;;  %v560_v33 = vsub.s32 0, %v559_v28 }
  0x13   : > { %698 = vmatprep.subr.msk.mxu0 %vm366_vm0, %v361_v7  ;;  %v358_v11 = vld [vmem:[%s879_s2] sm:$0xff] }
  0x14   : > { %535 = vperm.xlu0 %737, %v532_v5   ;;  %701 = vmatprep.subr.msk.mxu1 %vm366_vm0, %v443_v9 }
  0x15   : > { %699 = vmatpush1.msk.msra.mxu0 %vm366_vm0, %v848_v6  ;;  %702 = vmatpush1.msk.msra.mxu1 %vm366_vm0, %v356_v8 }
  0x16   : > { %700 = vmatmul.mubr.msk.f32.vlgmr.msra.gmra.mxu0 %vm362_vm1, %v359_v10  ;;  %703 = vmatmul.mubr.msk.f32.vlgmr.msra.gmra.mxu1 %vm362_vm1, %v358_v11 }
  0x8b   : > { %v526_v13 = vpop.permute.xlu0 %525  ;;  %v556_v34 = vpop.permute.xlu1 %555 }
  0x8c   : > { %v561_v39 = vrot.slane %v556_v34, %v560_v33 }
  0x8f   : > { %v536_v23 = vpop.permute.xlu0 %535 }
  0xd6   : > { %v437_v12 = vpop.f32.mrf.mxu0  ;;  %v517_v14 = vpop.f32.mrf.mxu1 }
  0xd7   : > { %v518_v15 = vadd.f32 %v517_v14, %v437_v12 }
  0xd8   : > { %v439_v16 = vpop.f32.mrf.mxu0  ;;  %v519_v17 = vpop.f32.mrf.mxu1 }
  0xd9   : > { %v528_v18 = vadd.f32 %v526_v13, %v518_v15  ;;  %v520_v19 = vadd.f32 %v519_v17, %v439_v16 }
  0xdb   : > { %v529_v20 = vadd.f32 %v526_v13, %v520_v19  ;;  %v530_v21 = vmax.f32 %v528_v18, 0.0 }
  0xdd   : > { %v531_v24 = vmax.f32 %v529_v20, 0.0  ;;  %v538_v25 = vmul.f32 %v536_v23, %v530_v21 }
  0xdf   : > { %v539_v26 = vmul.f32 %v536_v23, %v531_v24  ;;  %v540_v27 = vrot.slane %v538_v25, 4 }
  0xe1   : > { %v541_v29 = vadd.f32 %v540_v27, %v538_v25  ;;  %v546_v30 = vrot.slane %v539_v26, 4 }
  0xe3   : > { %v542_v31 = vrot.slane %v541_v29, 2  ;;  %v547_v32 = vadd.f32 %v546_v30, %v539_v26 }
  0xe5   : > { %v543_v35 = vadd.f32 %v542_v31, %v541_v29  ;;  %v548_v36 = vrot.slane %v547_v32, 2 }
  0xe7   : > { %v549_v37 = vadd.f32 %v548_v36, %v547_v32  ;;  %v544_v38 = vrot.slane %v543_v35, 1 }
  0xe9   : > { %v545_v40 = vadd.f32 %v544_v38, %v543_v35  ;;  %v550_v41 = vrot.slane %v549_v37, 1 }
  0xeb   : > { %v551_v42 = vadd.f32 %v550_v41, %v549_v37  ;;  %v562_v43 = vadd.f32 %v561_v39, %v545_v40 }
  0xed   : > { %v563_v44 = vadd.f32 %v561_v39, %v551_v42  ;;  %v704_v45 = vmul.f32 -1.442695, %v562_v43 }
  0xef   : > { %741 = vpow2.f32 %v704_v45  ;;  %v705_v46 = vmul.f32 -1.442695, %v563_v44 }
  0xf1   : > { %743 = vpow2.f32 %v705_v46 }
  0xfc   : > { %v742_v47 = vpop.eup %741 }
  0xfd   : > { %v570_v48 = vadd.f32 1.0, %v742_v47 }
  0xfe   : > { %v744_v49 = vpop.eup %743 }
  0xff   : > { %v571_v50 = vadd.f32 1.0, %v744_v49  ;;  %745 = vrcp.f32 %v570_v48 }
 0x101   : > { %747 = vrcp.f32 %v571_v50 }
 0x10c   : > { %v746_v51 = vpop.eup %745 }
 0x10e   : > { %v748_v52 = vpop.eup %747 }
 0x10f   : > { %v578_v53 = vcombine.low %v746_v51, %v748_v52 }
 0x111   : > { %v580_v54 = vmul.f32 %v578_v53, %v848_v6 }
 0x113   : > { %581 = vst [vmem:[%s354_s23] sm:$0xff] %v580_v54 }
 0x114 PF: > { %s19_s28 = sadd.s32 1, %s771_s28   ;;  %s885_s26 = smov %s767_s27 }
 0x115   : > { %p16_p5 = scmp.ge.s32.totalorder %s19_s28, 4   ;;  %s886_s27 = smov %s888_s6 }
 0x117   :  { %18 = sbr.rel (!%p16_p5) target bundleno = 3 (0x3), region = 81 }

</bundles_post_ra>
